<compile_context>
chip_gen: v6e
topology: v6e:2x2x1
jax: 0.10.0
libtpu: 0.0.40
codegen_flags: <defaults>
</compile_context>

<pallas_src>
import jax
import jax.numpy as jnp
from jax.experimental import pallas as pl
from jax.experimental.pallas import tpu as pltpu

# ----------------------------- configuration ---------------------------------
NUM_SEGMENTS = 4          # T
NUM_BATCHES = 2           # clips
N = NUM_BATCHES * NUM_SEGMENTS
C_IN = 16                 # input channels of the block
SHIFT_DIV = 4             # TIN shift_div
NF = C_IN // SHIFT_DIV    # num_folds (shifted channels)
DEFORM_GROUPS = 2         # hard-coded in TemporalInterlace
GROUP_SIZE = 2 * DEFORM_GROUPS    # offsets are cat([off, -off]) -> 4 shift groups
GC4 = NF // GROUP_SIZE    # channels per shift group (tin_shift group_channel)
GC2 = NF // DEFORM_GROUPS # channels per weight group
H = W = 8
HW = H * W
OC = 8                    # planes (output channels of the bottleneck conv1)
T = NUM_SEGMENTS
NB = NUM_BATCHES


# ----------------------------- fused Pallas kernel ----------------------------
def fused_tin_conv_kernel(comb_ref, w_ref, x_ref, o_ref, xs_ref):
    """Temporal-interlace shift + 1x1 conv, fully fused (single grid step).

    comb_ref : (NF, NB*T*T) f32  per-(fold-channel, clip) temporal mix matrices,
                                 column = (b*T + t)*T + s, WeightNet scale folded in.
    w_ref    : (OC, C_IN)   f32  1x1 conv weight.
    x_ref    : (C_IN, N*HW) f32  channel-major, lane = (b*T + t)*HW + hw.
    o_ref    : (OC, N*HW)   f32  lane-dense output.
    xs_ref   : (NF, N*HW)   f32  VMEM scratch for the shifted fold channels.
    """
    comb = comb_ref[...]                                    # (NF, NB*T*T)

    # ---- TIN shift of the first NF channels, vectorized over the 64 hw lanes ----
    for b in range(NB):                                     # static unroll: 2 clips
        src = [x_ref[:NF, (b * T + s) * HW:(b * T + s + 1) * HW]   # (NF, HW) each
               for s in range(T)]
        for t in range(T):                                  # static unroll: 4 frames
            col = (b * T + t) * T
            acc = comb[:, col:col + 1] * src[0]
            for s in range(1, T):
                acc = acc + comb[:, col + s:col + s + 1] * src[s]
            xs_ref[:, (b * T + t) * HW:(b * T + t + 1) * HW] = acc

    # ---- 1x1 conv: shifted folds + pass-through channels (never copied) ----------
    o_ref[...] = (
        jnp.dot(w_ref[:, :NF], xs_ref[...], preferred_element_type=jnp.float32)
        + jnp.dot(w_ref[:, NF:], x_ref[NF:, :], preferred_element_type=jnp.float32)
    )


# ------------------------- plain-JAX glue (tiny heads) ------------------------
def offset_net(xp, p):
    # xp: [NB, NF, T] -> offsets [NB, DEFORM_GROUPS] in (-2, 2)
    xpad = jnp.pad(xp, ((0, 0), (0, 0), (1, 1)))
    conv = p['off_conv_b'][0]
    for k in range(3):
        conv = conv + jnp.einsum('c,bct->bt', p['off_conv_w'][0, :, k],
                                 xpad[:, :, k:k + T])
    h = jax.nn.relu(conv @ p['off_fc1_w'].T + p['off_fc1_b'])
    z = h @ p['off_fc2_w'].T + p['off_fc2_b']
    return 4.0 * (jax.nn.sigmoid(z) - 0.5)


def weight_net(xp, p):
    # xp: [NB, NF, T] -> weights [NB, T, DEFORM_GROUPS] in (0, 2)
    xpad = jnp.pad(xp, ((0, 0), (0, 0), (1, 1)))
    conv = p['w_conv_b'][None, :, None]
    for k in range(3):
        conv = conv + jnp.einsum('oc,bct->bot', p['w_conv_w'][:, :, k],
                                 xpad[:, :, k:k + T])
    return 2.0 * jax.nn.sigmoid(jnp.transpose(conv, (0, 2, 1)))


# ------------------------------- forward pass --------------------------------
def combine_net_forward(x, params):
    # ---- net1 heads (scalar-sized, plain JAX): pool -> OffsetNet / WeightNet ----
    x_pooled = x[:, :NF].mean(axis=(2, 3))                     # (N, NF)
    xp = x_pooled.reshape(NB, T, NF).transpose(0, 2, 1)        # (NB, NF, T)
    off = offset_net(xp, params)                               # (NB, DG)
    xw = weight_net(xp, params)                                # (NB, T, DG)

    # ---- build per-(clip, fold-channel) 4x4 temporal interpolation matrices -----
    # comb[b, g, t, s] = xw[b, t, g2] * (w0 * [s == t - floor(off)]
    #                                    + w1 * [s == t - floor(off) - 1])
    # (equality masks against un-clipped source indices implement the zero-padding
    #  boundary handling of the reference tin_shift.)
    x_offset = jnp.concatenate([off, -off], axis=1)            # (NB, GROUP_SIZE)
    off0 = jnp.floor(x_offset)
    w0 = 1.0 - (x_offset - off0)
    w1 = 1.0 - w0
    off0_i = off0.astype(jnp.int32)

    t_ids = jnp.arange(T)
    s_ids = jnp.arange(T)
    src0 = t_ids[None, None, :] - off0_i[:, :, None]           # (NB, G, T)
    src1 = src0 - 1
    m0 = (s_ids[None, None, None, :] == src0[..., None]).astype(jnp.float32)
    m1 = (s_ids[None, None, None, :] == src1[..., None]).astype(jnp.float32)
    comb_g = w0[..., None, None] * m0 + w1[..., None, None] * m1   # (NB, G, T, T)
    g2 = jnp.array([(g * GC4) // GC2 for g in range(GROUP_SIZE)])
    xw_g = jnp.transpose(xw, (0, 2, 1))[:, g2, :]                  # (NB, G, T)
    comb_g = comb_g * xw_g[..., None]
    comb_c = jnp.repeat(comb_g, GC4, axis=1)                       # (NB, NF, T, T)
    comb_k = jnp.transpose(comb_c, (1, 0, 2, 3)).reshape(NF, NB * T * T)

    # ---- lane-dense layout plumbing (outside the kernel) -------------------------
    x_t = x.reshape(N, C_IN, HW).transpose(1, 0, 2).reshape(C_IN, N * HW)

    y2d = pl.pallas_call(
        fused_tin_conv_kernel,
        out_shape=jax.ShapeDtypeStruct((OC, N * HW), jnp.float32),
        grid=(1,),
        in_specs=[
            pl.BlockSpec((NF, NB * T * T), lambda i: (0, 0)),      # comb
            pl.BlockSpec((OC, C_IN), lambda i: (0, 0)),            # conv weight
            pl.BlockSpec((C_IN, N * HW), lambda i: (0, 0)),        # activations
        ],
        out_specs=pl.BlockSpec((OC, N * HW), lambda i: (0, 0)),
        scratch_shapes=[pltpu.VMEM((NF, N * HW), jnp.float32)],
        compiler_params=pltpu.CompilerParams(
            dimension_semantics=("arbitrary",)),
    )(comb_k, params['conv2d_w'], x_t)

    return y2d.reshape(OC, N, H, W).transpose(1, 0, 2, 3)          # (N, OC, H, W)


# ---------------------------- pure-JAX reference ------------------------------
def reference_forward(x, p):
    x_desc = x[:, :NF].reshape(NB, T, NF, H, W)
    xp = jnp.transpose(x_desc.mean(axis=(3, 4)), (0, 2, 1))        # (NB, NF, T)
    off = offset_net(xp, p)
    xw = weight_net(xp, p)
    x_offset = jnp.concatenate([off, -off], axis=1)
    off0 = jnp.floor(x_offset).astype(jnp.int32)
    w0 = 1.0 - (x_offset - off0.astype(jnp.float32))
    w1 = 1.0 - w0
    out_folds = jnp.zeros_like(x_desc)
    for g in range(GROUP_SIZE):
        cs = slice(g * GC4, (g + 1) * GC4)
        g2 = (g * GC4) // GC2
        for t in range(T):
            acc = jnp.zeros((NB, GC4, H, W), jnp.float32)
            for d, wgt in ((0, w0[:, g]), (1, w1[:, g])):
                src = t - (off0[:, g] + d)
                valid = ((src >= 0) & (src < T)).astype(jnp.float32)
                srcc = jnp.clip(src, 0, T - 1)
                vals = x_desc[jnp.arange(NB), srcc, cs]
                acc = acc + (wgt * valid)[:, None, None, None] * vals
            acc = acc * xw[:, t, g2][:, None, None, None]
            out_folds = out_folds.at[:, t, cs].set(acc)
    x_out = x.at[:, :NF].set(out_folds.reshape(N, NF, H, W))
    return jnp.einsum('oc,nchw->nohw', p['conv2d_w'], x_out)


# ----------------------------------- main -------------------------------------
if __name__ == "__main__":
    key = jax.random.PRNGKey(0)
    ks = jax.random.split(key, 8)
    params = {
        # OffsetNet: Conv1d(NF, 1, 3, pad=1), fc1(T,T), fc2(T,2) with bias=0.5108
        'off_conv_w': 0.2 * jax.random.normal(ks[0], (1, NF, 3), jnp.float32),
        'off_conv_b': 0.1 * jax.random.normal(ks[1], (1,), jnp.float32),
        'off_fc1_w': 0.2 * jax.random.normal(ks[2], (T, T), jnp.float32),
        'off_fc1_b': 0.1 * jax.random.normal(ks[3], (T,), jnp.float32),
        'off_fc2_w': 0.2 * jax.random.normal(ks[4], (DEFORM_GROUPS, T), jnp.float32),
        'off_fc2_b': jnp.full((DEFORM_GROUPS,), 0.5108, jnp.float32),
        # WeightNet: Conv1d(NF, 2, 3, pad=1), bias initialized to 0
        'w_conv_w': 0.2 * jax.random.normal(ks[5], (DEFORM_GROUPS, NF, 3), jnp.float32),
        'w_conv_b': jnp.zeros((DEFORM_GROUPS,), jnp.float32),
        # net2: Conv2d(C_IN, OC, kernel_size=1, bias=False)
        'conv2d_w': 0.2 * jax.random.normal(ks[6], (OC, C_IN), jnp.float32),
    }
    x = jax.random.normal(ks[7], (N, C_IN, H, W), jnp.float32)

    out = jax.jit(combine_net_forward)(x, params)
    out = jax.block_until_ready(out)

    ref = reference_forward(x, params)
    if not jnp.allclose(out, ref, atol=5e-4, rtol=5e-4):
        raise AssertionError("Pallas CombineNet output mismatch vs reference")

    print("KERNEL_OK")
</pallas_src>

<mosaic_0001>
module attributes {stable_mosaic.version = 11 : i64} {
  func.func @fused_tin_conv_kernel(%arg0: i32, %arg1: memref<4x32xf32, #tpu.memory_space<vmem>>, %arg2: memref<8x16xf32, #tpu.memory_space<vmem>>, %arg3: memref<16x512xf32, #tpu.memory_space<vmem>>, %arg4: memref<8x512xf32, #tpu.memory_space<vmem>>, %arg5: memref<4x512xf32, #tpu.memory_space<vmem>>) attributes {dimension_semantics = [#tpu.dimension_semantics<arbitrary>], iteration_bounds = array<i64: 1>, scalar_prefetch = 0 : i64, scratch_operands = 1 : i64, tpu.core_type = #tpu.core_type<tc>, window_params = [{pipeline_mode = #tpu.pipeline_mode<synchronous>, transform_indices = @transform_0, window_bounds = array<i64: 4, 32>}, {pipeline_mode = #tpu.pipeline_mode<synchronous>, transform_indices = @transform_1, window_bounds = array<i64: 8, 16>}, {pipeline_mode = #tpu.pipeline_mode<synchronous>, transform_indices = @transform_2, window_bounds = array<i64: 16, 512>}, {pipeline_mode = #tpu.pipeline_mode<synchronous>, transform_indices = @transform_3, window_bounds = array<i64: 8, 512>}]} {
    %c0 = arith.constant 0 : index
    %c0_0 = arith.constant 0 : index
    %0 = vector.load %arg1[%c0, %c0_0] : memref<4x32xf32, #tpu.memory_space<vmem>>, vector<4x32xf32>
    %c0_1 = arith.constant 0 : index
    %c0_2 = arith.constant 0 : index
    %1 = vector.load %arg3[%c0_1, %c0_2] : memref<16x512xf32, #tpu.memory_space<vmem>>, vector<4x64xf32>
    %c0_3 = arith.constant 0 : index
    %c64 = arith.constant 64 : index
    %2 = vector.load %arg3[%c0_3, %c64] : memref<16x512xf32, #tpu.memory_space<vmem>>, vector<4x64xf32>
    %c0_4 = arith.constant 0 : index
    %c128 = arith.constant 128 : index
    %3 = vector.load %arg3[%c0_4, %c128] : memref<16x512xf32, #tpu.memory_space<vmem>>, vector<4x64xf32>
    %c0_5 = arith.constant 0 : index
    %c192 = arith.constant 192 : index
    %4 = vector.load %arg3[%c0_5, %c192] : memref<16x512xf32, #tpu.memory_space<vmem>>, vector<4x64xf32>
    %5 = vector.extract_strided_slice %0 {offsets = [0, 0], sizes = [4, 1], strides = [1, 1]} : vector<4x32xf32> to vector<4x1xf32>
    %6 = vector.broadcast %5 : vector<4x1xf32> to vector<4x64xf32>
    %7 = arith.mulf %6, %1 : vector<4x64xf32>
    %8 = vector.extract_strided_slice %0 {offsets = [0, 1], sizes = [4, 1], strides = [1, 1]} : vector<4x32xf32> to vector<4x1xf32>
    %9 = vector.broadcast %8 : vector<4x1xf32> to vector<4x64xf32>
    %10 = arith.mulf %9, %2 : vector<4x64xf32>
    %11 = arith.addf %7, %10 : vector<4x64xf32>
    %12 = vector.extract_strided_slice %0 {offsets = [0, 2], sizes = [4, 1], strides = [1, 1]} : vector<4x32xf32> to vector<4x1xf32>
    %13 = vector.broadcast %12 : vector<4x1xf32> to vector<4x64xf32>
    %14 = arith.mulf %13, %3 : vector<4x64xf32>
    %15 = arith.addf %11, %14 : vector<4x64xf32>
    %16 = vector.extract_strided_slice %0 {offsets = [0, 3], sizes = [4, 1], strides = [1, 1]} : vector<4x32xf32> to vector<4x1xf32>
    %17 = vector.broadcast %16 : vector<4x1xf32> to vector<4x64xf32>
    %18 = arith.mulf %17, %4 : vector<4x64xf32>
    %19 = arith.addf %15, %18 : vector<4x64xf32>
    %c0_6 = arith.constant 0 : index
    %c0_7 = arith.constant 0 : index
    %20 = vector.load %arg5[%c0_6, %c0_7] : memref<4x512xf32, #tpu.memory_space<vmem>>, vector<4x64xf32>
    tpu.vector_store %arg5[%c0_6, %c0_7], %19 {strides = array<i32>} : memref<4x512xf32, #tpu.memory_space<vmem>>, vector<4x64xf32>,
    %21 = vector.extract_strided_slice %0 {offsets = [0, 4], sizes = [4, 1], strides = [1, 1]} : vector<4x32xf32> to vector<4x1xf32>
    %22 = vector.broadcast %21 : vector<4x1xf32> to vector<4x64xf32>
    %23 = arith.mulf %22, %1 : vector<4x64xf32>
    %24 = vector.extract_strided_slice %0 {offsets = [0, 5], sizes = [4, 1], strides = [1, 1]} : vector<4x32xf32> to vector<4x1xf32>
    %25 = vector.broadcast %24 : vector<4x1xf32> to vector<4x64xf32>
    %26 = arith.mulf %25, %2 : vector<4x64xf32>
    %27 = arith.addf %23, %26 : vector<4x64xf32>
    %28 = vector.extract_strided_slice %0 {offsets = [0, 6], sizes = [4, 1], strides = [1, 1]} : vector<4x32xf32> to vector<4x1xf32>
    %29 = vector.broadcast %28 : vector<4x1xf32> to vector<4x64xf32>
    %30 = arith.mulf %29, %3 : vector<4x64xf32>
    %31 = arith.addf %27, %30 : vector<4x64xf32>
    %32 = vector.extract_strided_slice %0 {offsets = [0, 7], sizes = [4, 1], strides = [1, 1]} : vector<4x32xf32> to vector<4x1xf32>
    %33 = vector.broadcast %32 : vector<4x1xf32> to vector<4x64xf32>
    %34 = arith.mulf %33, %4 : vector<4x64xf32>
    %35 = arith.addf %31, %34 : vector<4x64xf32>
    %c0_8 = arith.constant 0 : index
    %c64_9 = arith.constant 64 : index
    %36 = vector.load %arg5[%c0_8, %c64_9] : memref<4x512xf32, #tpu.memory_space<vmem>>, vector<4x64xf32>
    tpu.vector_store %arg5[%c0_8, %c64_9], %35 {strides = array<i32>} : memref<4x512xf32, #tpu.memory_space<vmem>>, vector<4x64xf32>,
    %37 = vector.extract_strided_slice %0 {offsets = [0, 8], sizes = [4, 1], strides = [1, 1]} : vector<4x32xf32> to vector<4x1xf32>
    %38 = vector.broadcast %37 : vector<4x1xf32> to vector<4x64xf32>
    %39 = arith.mulf %38, %1 : vector<4x64xf32>
    %40 = vector.extract_strided_slice %0 {offsets = [0, 9], sizes = [4, 1], strides = [1, 1]} : vector<4x32xf32> to vector<4x1xf32>
    %41 = vector.broadcast %40 : vector<4x1xf32> to vector<4x64xf32>
    %42 = arith.mulf %41, %2 : vector<4x64xf32>
    %43 = arith.addf %39, %42 : vector<4x64xf32>
    %44 = vector.extract_strided_slice %0 {offsets = [0, 10], sizes = [4, 1], strides = [1, 1]} : vector<4x32xf32> to vector<4x1xf32>
    %45 = vector.broadcast %44 : vector<4x1xf32> to vector<4x64xf32>
    %46 = arith.mulf %45, %3 : vector<4x64xf32>
    %47 = arith.addf %43, %46 : vector<4x64xf32>
    %48 = vector.extract_strided_slice %0 {offsets = [0, 11], sizes = [4, 1], strides = [1, 1]} : vector<4x32xf32> to vector<4x1xf32>
    %49 = vector.broadcast %48 : vector<4x1xf32> to vector<4x64xf32>
    %50 = arith.mulf %49, %4 : vector<4x64xf32>
    %51 = arith.addf %47, %50 : vector<4x64xf32>
    %c0_10 = arith.constant 0 : index
    %c128_11 = arith.constant 128 : index
    %52 = vector.load %arg5[%c0_10, %c128_11] : memref<4x512xf32, #tpu.memory_space<vmem>>, vector<4x64xf32>
    tpu.vector_store %arg5[%c0_10, %c128_11], %51 {strides = array<i32>} : memref<4x512xf32, #tpu.memory_space<vmem>>, vector<4x64xf32>,
    %53 = vector.extract_strided_slice %0 {offsets = [0, 12], sizes = [4, 1], strides = [1, 1]} : vector<4x32xf32> to vector<4x1xf32>
    %54 = vector.broadcast %53 : vector<4x1xf32> to vector<4x64xf32>
    %55 = arith.mulf %54, %1 : vector<4x64xf32>
    %56 = vector.extract_strided_slice %0 {offsets = [0, 13], sizes = [4, 1], strides = [1, 1]} : vector<4x32xf32> to vector<4x1xf32>
    %57 = vector.broadcast %56 : vector<4x1xf32> to vector<4x64xf32>
    %58 = arith.mulf %57, %2 : vector<4x64xf32>
    %59 = arith.addf %55, %58 : vector<4x64xf32>
    %60 = vector.extract_strided_slice %0 {offsets = [0, 14], sizes = [4, 1], strides = [1, 1]} : vector<4x32xf32> to vector<4x1xf32>
    %61 = vector.broadcast %60 : vector<4x1xf32> to vector<4x64xf32>
    %62 = arith.mulf %61, %3 : vector<4x64xf32>
    %63 = arith.addf %59, %62 : vector<4x64xf32>
    %64 = vector.extract_strided_slice %0 {offsets = [0, 15], sizes = [4, 1], strides = [1, 1]} : vector<4x32xf32> to vector<4x1xf32>
    %65 = vector.broadcast %64 : vector<4x1xf32> to vector<4x64xf32>
    %66 = arith.mulf %65, %4 : vector<4x64xf32>
    %67 = arith.addf %63, %66 : vector<4x64xf32>
    %c0_12 = arith.constant 0 : index
    %c192_13 = arith.constant 192 : index
    %68 = vector.load %arg5[%c0_12, %c192_13] : memref<4x512xf32, #tpu.memory_space<vmem>>, vector<4x64xf32>
    tpu.vector_store %arg5[%c0_12, %c192_13], %67 {strides = array<i32>} : memref<4x512xf32, #tpu.memory_space<vmem>>, vector<4x64xf32>,
    %c0_14 = arith.constant 0 : index
    %c256 = arith.constant 256 : index
    %69 = vector.load %arg3[%c0_14, %c256] : memref<16x512xf32, #tpu.memory_space<vmem>>, vector<4x64xf32>
    %c0_15 = arith.constant 0 : index
    %c320 = arith.constant 320 : index
    %70 = vector.load %arg3[%c0_15, %c320] : memref<16x512xf32, #tpu.memory_space<vmem>>, vector<4x64xf32>
    %c0_16 = arith.constant 0 : index
    %c384 = arith.constant 384 : index
    %71 = vector.load %arg3[%c0_16, %c384] : memref<16x512xf32, #tpu.memory_space<vmem>>, vector<4x64xf32>
    %c0_17 = arith.constant 0 : index
    %c448 = arith.constant 448 : index
    %72 = vector.load %arg3[%c0_17, %c448] : memref<16x512xf32, #tpu.memory_space<vmem>>, vector<4x64xf32>
    %73 = vector.extract_strided_slice %0 {offsets = [0, 16], sizes = [4, 1], strides = [1, 1]} : vector<4x32xf32> to vector<4x1xf32>
    %74 = vector.broadcast %73 : vector<4x1xf32> to vector<4x64xf32>
    %75 = arith.mulf %74, %69 : vector<4x64xf32>
    %76 = vector.extract_strided_slice %0 {offsets = [0, 17], sizes = [4, 1], strides = [1, 1]} : vector<4x32xf32> to vector<4x1xf32>
    %77 = vector.broadcast %76 : vector<4x1xf32> to vector<4x64xf32>
    %78 = arith.mulf %77, %70 : vector<4x64xf32>
    %79 = arith.addf %75, %78 : vector<4x64xf32>
    %80 = vector.extract_strided_slice %0 {offsets = [0, 18], sizes = [4, 1], strides = [1, 1]} : vector<4x32xf32> to vector<4x1xf32>
    %81 = vector.broadcast %80 : vector<4x1xf32> to vector<4x64xf32>
    %82 = arith.mulf %81, %71 : vector<4x64xf32>
    %83 = arith.addf %79, %82 : vector<4x64xf32>
    %84 = vector.extract_strided_slice %0 {offsets = [0, 19], sizes = [4, 1], strides = [1, 1]} : vector<4x32xf32> to vector<4x1xf32>
    %85 = vector.broadcast %84 : vector<4x1xf32> to vector<4x64xf32>
    %86 = arith.mulf %85, %72 : vector<4x64xf32>
    %87 = arith.addf %83, %86 : vector<4x64xf32>
    %c0_18 = arith.constant 0 : index
    %c256_19 = arith.constant 256 : index
    %88 = vector.load %arg5[%c0_18, %c256_19] : memref<4x512xf32, #tpu.memory_space<vmem>>, vector<4x64xf32>
    tpu.vector_store %arg5[%c0_18, %c256_19], %87 {strides = array<i32>} : memref<4x512xf32, #tpu.memory_space<vmem>>, vector<4x64xf32>,
    %89 = vector.extract_strided_slice %0 {offsets = [0, 20], sizes = [4, 1], strides = [1, 1]} : vector<4x32xf32> to vector<4x1xf32>
    %90 = vector.broadcast %89 : vector<4x1xf32> to vector<4x64xf32>
    %91 = arith.mulf %90, %69 : vector<4x64xf32>
    %92 = vector.extract_strided_slice %0 {offsets = [0, 21], sizes = [4, 1], strides = [1, 1]} : vector<4x32xf32> to vector<4x1xf32>
    %93 = vector.broadcast %92 : vector<4x1xf32> to vector<4x64xf32>
    %94 = arith.mulf %93, %70 : vector<4x64xf32>
    %95 = arith.addf %91, %94 : vector<4x64xf32>
    %96 = vector.extract_strided_slice %0 {offsets = [0, 22], sizes = [4, 1], strides = [1, 1]} : vector<4x32xf32> to vector<4x1xf32>
    %97 = vector.broadcast %96 : vector<4x1xf32> to vector<4x64xf32>
    %98 = arith.mulf %97, %71 : vector<4x64xf32>
    %99 = arith.addf %95, %98 : vector<4x64xf32>
    %100 = vector.extract_strided_slice %0 {offsets = [0, 23], sizes = [4, 1], strides = [1, 1]} : vector<4x32xf32> to vector<4x1xf32>
    %101 = vector.broadcast %100 : vector<4x1xf32> to vector<4x64xf32>
    %102 = arith.mulf %101, %72 : vector<4x64xf32>
    %103 = arith.addf %99, %102 : vector<4x64xf32>
    %c0_20 = arith.constant 0 : index
    %c320_21 = arith.constant 320 : index
    %104 = vector.load %arg5[%c0_20, %c320_21] : memref<4x512xf32, #tpu.memory_space<vmem>>, vector<4x64xf32>
    tpu.vector_store %arg5[%c0_20, %c320_21], %103 {strides = array<i32>} : memref<4x512xf32, #tpu.memory_space<vmem>>, vector<4x64xf32>,
    %105 = vector.extract_strided_slice %0 {offsets = [0, 24], sizes = [4, 1], strides = [1, 1]} : vector<4x32xf32> to vector<4x1xf32>
    %106 = vector.broadcast %105 : vector<4x1xf32> to vector<4x64xf32>
    %107 = arith.mulf %106, %69 : vector<4x64xf32>
    %108 = vector.extract_strided_slice %0 {offsets = [0, 25], sizes = [4, 1], strides = [1, 1]} : vector<4x32xf32> to vector<4x1xf32>
    %109 = vector.broadcast %108 : vector<4x1xf32> to vector<4x64xf32>
    %110 = arith.mulf %109, %70 : vector<4x64xf32>
    %111 = arith.addf %107, %110 : vector<4x64xf32>
    %112 = vector.extract_strided_slice %0 {offsets = [0, 26], sizes = [4, 1], strides = [1, 1]} : vector<4x32xf32> to vector<4x1xf32>
    %113 = vector.broadcast %112 : vector<4x1xf32> to vector<4x64xf32>
    %114 = arith.mulf %113, %71 : vector<4x64xf32>
    %115 = arith.addf %111, %114 : vector<4x64xf32>
    %116 = vector.extract_strided_slice %0 {offsets = [0, 27], sizes = [4, 1], strides = [1, 1]} : vector<4x32xf32> to vector<4x1xf32>
    %117 = vector.broadcast %116 : vector<4x1xf32> to vector<4x64xf32>
    %118 = arith.mulf %117, %72 : vector<4x64xf32>
    %119 = arith.addf %115, %118 : vector<4x64xf32>
    %c0_22 = arith.constant 0 : index
    %c384_23 = arith.constant 384 : index
    %120 = vector.load %arg5[%c0_22, %c384_23] : memref<4x512xf32, #tpu.memory_space<vmem>>, vector<4x64xf32>
    tpu.vector_store %arg5[%c0_22, %c384_23], %119 {strides = array<i32>} : memref<4x512xf32, #tpu.memory_space<vmem>>, vector<4x64xf32>,
    %121 = vector.extract_strided_slice %0 {offsets = [0, 28], sizes = [4, 1], strides = [1, 1]} : vector<4x32xf32> to vector<4x1xf32>
    %122 = vector.broadcast %121 : vector<4x1xf32> to vector<4x64xf32>
    %123 = arith.mulf %122, %69 : vector<4x64xf32>
    %124 = vector.extract_strided_slice %0 {offsets = [0, 29], sizes = [4, 1], strides = [1, 1]} : vector<4x32xf32> to vector<4x1xf32>
    %125 = vector.broadcast %124 : vector<4x1xf32> to vector<4x64xf32>
    %126 = arith.mulf %125, %70 : vector<4x64xf32>
    %127 = arith.addf %123, %126 : vector<4x64xf32>
    %128 = vector.extract_strided_slice %0 {offsets = [0, 30], sizes = [4, 1], strides = [1, 1]} : vector<4x32xf32> to vector<4x1xf32>
    %129 = vector.broadcast %128 : vector<4x1xf32> to vector<4x64xf32>
    %130 = arith.mulf %129, %71 : vector<4x64xf32>
    %131 = arith.addf %127, %130 : vector<4x64xf32>
    %132 = vector.extract_strided_slice %0 {offsets = [0, 31], sizes = [4, 1], strides = [1, 1]} : vector<4x32xf32> to vector<4x1xf32>
    %133 = vector.broadcast %132 : vector<4x1xf32> to vector<4x64xf32>
    %134 = arith.mulf %133, %72 : vector<4x64xf32>
    %135 = arith.addf %131, %134 : vector<4x64xf32>
    %c0_24 = arith.constant 0 : index
    %c448_25 = arith.constant 448 : index
    %136 = vector.load %arg5[%c0_24, %c448_25] : memref<4x512xf32, #tpu.memory_space<vmem>>, vector<4x64xf32>
    tpu.vector_store %arg5[%c0_24, %c448_25], %135 {strides = array<i32>} : memref<4x512xf32, #tpu.memory_space<vmem>>, vector<4x64xf32>,
    %c0_26 = arith.constant 0 : index
    %c0_27 = arith.constant 0 : index
    %137 = vector.load %arg2[%c0_26, %c0_27] : memref<8x16xf32, #tpu.memory_space<vmem>>, vector<8x4xf32>
    %c0_28 = arith.constant 0 : index
    %c0_29 = arith.constant 0 : index
    %138 = vector.load %arg5[%c0_28, %c0_29] : memref<4x512xf32, #tpu.memory_space<vmem>>, vector<4x512xf32>
    %cst = arith.constant dense<0.000000e+00> : vector<8x512xf32>
    %139 = tpu.matmul %137, %138, %cst {dimension_numbers = #tpu.dot_dimension_numbers<[1], [0], [0], [1], [0, 0, 1, 1], [], []>} : vector<8x4xf32>, vector<4x512xf32>, vector<8x512xf32> -> vector<8x512xf32>
    %c0_30 = arith.constant 0 : index
    %c4 = arith.constant 4 : index
    %140 = vector.load %arg2[%c0_30, %c4] : memref<8x16xf32, #tpu.memory_space<vmem>>, vector<8x12xf32>
    %c4_31 = arith.constant 4 : index
    %c0_32 = arith.constant 0 : index
    %141 = vector.load %arg3[%c4_31, %c0_32] : memref<16x512xf32, #tpu.memory_space<vmem>>, vector<12x512xf32>
    %cst_33 = arith.constant dense<0.000000e+00> : vector<8x512xf32>
    %142 = tpu.matmul %140, %141, %cst_33 {dimension_numbers = #tpu.dot_dimension_numbers<[1], [0], [0], [1], [0, 0, 1, 1], [], []>} : vector<8x12xf32>, vector<12x512xf32>, vector<8x512xf32> -> vector<8x512xf32>
    %143 = arith.addf %139, %142 : vector<8x512xf32>
    %c0_34 = arith.constant 0 : index
    %c0_35 = arith.constant 0 : index
    %144 = vector.load %arg4[%c0_34, %c0_35] : memref<8x512xf32, #tpu.memory_space<vmem>>, vector<8x512xf32>
    tpu.vector_store %arg4[%c0_34, %c0_35], %143 {strides = array<i32>} : memref<8x512xf32, #tpu.memory_space<vmem>>, vector<8x512xf32>,
    return
  }
  func.func @transform_0(%arg0: i32) -> (i32, i32) {
    %c0_i32 = arith.constant 0 : i32
    %c0_i32_0 = arith.constant 0 : i32
    %c0_i32_1 = arith.constant 0 : i32
    return %c0_i32, %c0_i32_0 : i32, i32
  }
  func.func @transform_1(%arg0: i32) -> (i32, i32) {
    %c0_i32 = arith.constant 0 : i32
    %c0_i32_0 = arith.constant 0 : i32
    %c0_i32_1 = arith.constant 0 : i32
    return %c0_i32, %c0_i32_0 : i32, i32
  }
  func.func @transform_2(%arg0: i32) -> (i32, i32) {
    %c0_i32 = arith.constant 0 : i32
    %c0_i32_0 = arith.constant 0 : i32
    %c0_i32_1 = arith.constant 0 : i32
    return %c0_i32, %c0_i32_0 : i32, i32
  }
  func.func @transform_3(%arg0: i32) -> (i32, i32) {
    %c0_i32 = arith.constant 0 : i32
    %c0_i32_0 = arith.constant 0 : i32
    %c0_i32_1 = arith.constant 0 : i32
    return %c0_i32, %c0_i32_0 : i32, i32
  }
}

</mosaic_0001>

<bundles_post_ra>
// kernel: combine_net_forward.1
= control target key start
LH: loop header
LB: loop body
LE: loop exit
PB: predicated region body
PF: predicated region fallthrough
CT: control target
= control target key end

     0   :  { %v733_v0 = vmov 21   ;;  %v734_v1 = vmov 5   ;;  %v735_v3 = vmov 29   ;;  %v736_v4 = vmov 13   ;;  %s759_s17 = smov 64   ;;  %s767_s12 = smov 124   ;;  %s959_s0 = inlined_call_operand.vmem [shape: f32[4,32], index: 0, kind: input, shape index: {}]   ;;  %s960_s2 = inlined_call_operand.vmem [shape: f32[16,512], index: 2, kind: input, shape index: {}]   ;;  %s961_s1 = inlined_call_operand.vmem [shape: f32[8,16], index: 1, kind: input, shape index: {}]   ;;  %s962_s3 = inlined_call_operand.vmem [shape: f32[8,512], index: 3, kind: output, shape index: {}]  }
   0x1   :  { %700 = vset.pattern.permute.xlu1 %v733_v0  ;;  %698 = vset.pattern.permute.xlu0 %v734_v1  ;;  %v791_v2 = vld [vmem:[%s959_s0] sm:$0xf]  ;;  %v737_v5 = vmov 7   ;;  %v738_v6 = vmov 15   ;;  %v739_v7 = vmov 23   ;;  %v740_v8 = vmov 1  }
   0x2   :  { %196 = vperm.xlu1 %700, %v791_v2   ;;  %57 = vperm.xlu0 %698, %v791_v2   ;;  %v741_v9 = vmov 31   ;;  %v742_v10 = vmov 25   ;;  %v743_v11 = vmov 9   ;;  %v744_v12 = vmov 20   ;;  %v821_v27 = vld [vmem:[%s960_s2 + $0x10] sm:$0xf] }
   0x3   :  { %v745_v13 = vmov 17   ;;  %v746_v14 = vmov 14   ;;  %v747_v15 = vmov 4   ;;  %v748_v16 = vmov 3   ;;  %v826_v28 = vld [vmem:[%s960_s2] sm:$0xf] }
   0x4   :  { %v749_v17 = vmov 12   ;;  %v750_v18 = vmov 27   ;;  %v751_v19 = vmov 28   ;;  %v752_v20 = vmov 0   ;;  %v837_v36 = vld [vmem:[%s960_s2 + $0x8] sm:$0xf] }
   0x5   :  { %v753_v21 = vmov 6   ;;  %v754_v22 = vmov 22   ;;  %v755_v23 = vmov 30   ;;  %v756_v24 = vmov 11   ;;  %v847_v42 = vld [vmem:[%s960_s2 + $0x18] sm:$0xf] }
   0x6   :  { %701 = vset.pattern.permute.xlu1 %v735_v3  ;;  %699 = vset.pattern.permute.xlu0 %v736_v4  ;;  %v757_v25 = vmov 19   ;;  %v758_v26 = vmov 8   ;;  %v760_v48 = vmov 24   ;;  %v761_v51 = vmov 16  }
   0x7   :  { %264 = vperm.xlu1 %701, %v791_v2   ;;  %126 = vperm.xlu0 %699, %v791_v2   ;;  %v762_v52 = vmov 18   ;;  %v763_v56 = vmov 2   ;;  %v764_v60 = vmov 10   ;;  %v765_v62 = vmov 26  }
   0x8   :  { %vm316_vm0 = vcmask 1043456   ;;  %vm49_vm1 = vcmask 519168   ;;  %vm86_vm2 = vcmask 1043968   ;;  %vm333_vm3 = vcmask 97280  }
   0x9   :  { %vm490_vm4 = vcmask 31744  }
   0xb   :  { %702 = vset.pattern.permute.xlu1 %v737_v5  ;;  %703 = vset.pattern.permute.xlu0 %v738_v6 }
   0xc   :  { %73 = vperm.xlu1 %702, %v791_v2   ;;  %142 = vperm.xlu0 %703, %v791_v2  }
  0x10   :  { %704 = vset.pattern.permute.xlu1 %v739_v7  ;;  %706 = vset.pattern.permute.xlu0 %v740_v8 }
  0x11   :  { %212 = vperm.xlu1 %704, %v791_v2   ;;  %24 = vperm.xlu0 %706, %v791_v2  }
  0x15   :  { %705 = vset.pattern.permute.xlu1 %v741_v9  ;;  %709 = vset.pattern.permute.xlu0 %v742_v10 }
  0x16   :  { %280 = vperm.xlu1 %705, %v791_v2   ;;  %232 = vperm.xlu0 %709, %v791_v2  }
  0x1a   :  { %707 = vset.pattern.permute.xlu1 %v743_v11  ;;  %712 = vset.pattern.permute.xlu0 %v744_v12 }
  0x1b   :  { %94 = vperm.xlu1 %707, %v791_v2   ;;  %191 = vperm.xlu0 %712, %v791_v2  }
  0x1f   :  { %708 = vset.pattern.permute.xlu1 %v745_v13  ;;  %715 = vset.pattern.permute.xlu0 %v746_v14 }
  0x20   :  { %164 = vperm.xlu1 %708, %v791_v2   ;;  %136 = vperm.xlu0 %715, %v791_v2  }
  0x24   :  { %710 = vset.pattern.permute.xlu1 %v747_v15  ;;  %718 = vset.pattern.permute.xlu0 %v748_v16 }
  0x25   :  { %52 = vperm.xlu1 %710, %v791_v2   ;;  %40 = vperm.xlu0 %718, %v791_v2  }
  0x29   :  { %711 = vset.pattern.permute.xlu1 %v749_v17  ;;  %721 = vset.pattern.permute.xlu0 %v750_v18 }
  0x2a   :  { %121 = vperm.xlu1 %711, %v791_v2   ;;  %248 = vperm.xlu0 %721, %v791_v2  }
  0x2e   :  { %713 = vset.pattern.permute.xlu1 %v751_v19  ;;  %722 = vset.pattern.permute.xlu0 %v752_v20 }
  0x2f   :  { %259 = vperm.xlu1 %713, %v791_v2  }
  0x33   :  { %714 = vset.pattern.permute.xlu1 %v753_v21 }
  0x34   :  { %67 = vperm.xlu1 %714, %v791_v2  }
  0x38   :  { %716 = vset.pattern.permute.xlu1 %v754_v22 }
  0x39   :  { %206 = vperm.xlu1 %716, %v791_v2  }
  0x3d   :  { %717 = vset.pattern.permute.xlu1 %v755_v23 }
  0x3e   :  { %274 = vperm.xlu1 %717, %v791_v2  }
  0x42   :  { %719 = vset.pattern.permute.xlu1 %v756_v24 }
  0x43   :  { %110 = vperm.xlu1 %719, %v791_v2  }
  0x47   :  { %720 = vset.pattern.permute.xlu1 %v757_v25  ;;  %v302_v25 = vld [vmem:[%s960_s2 + $0x28] sm:$0xff] }
  0x48   :  { %180 = vperm.xlu1 %720, %v791_v2  }
  0x4c   :  { %723 = vset.pattern.permute.xlu1 %v758_v26 }
  0x7d   :  { %v197_v29 = vpop.permute.xlu1 %196  ;;  %v58_v30 = vpop.permute.xlu0 %57 }
  0x7e   :  { %v199_v31 = vmul.f32 %v197_v29, %v821_v27  ;;  %v60_v32 = vmul.f32 %v58_v30, %v826_v28  ;;  %v321_v30 = vrot.slane %v302_v25, 4 }
  0x80   :  { %201 = vrot.lane.b32.xlu0 %v199_v31, %s759_s17  ;;  %62 = vrot.lane.b32.xlu1 %v60_v32, %s759_s17  ;;  %v301_v31 = vld [vmem:[%s960_s2 + $0x20] sm:$0xff]  ;;  %v298_v32 = vld [vmem:[%s960_s2 + $0x8] sm:$0xf0] }
  0x81   :  { %651 = vmatprep.subr.msk.mxu0 %vm316_vm0, %v321_v30 }
  0x82   :  { %v265_v33 = vpop.permute.xlu1 %264  ;;  %v127_v34 = vpop.permute.xlu0 %126 }
  0x83   :  { %v129_v35 = vmul.f32 %v127_v34, %v826_v28  ;;  %v267_v37 = vmul.f32 %v265_v33, %v821_v27  ;;  %v318_v33 = vrot.slane %v301_v31, 4  ;;  %v320_v34 = vrot.slane %v298_v32, 4 }
  0x85   :  { %131 = vrot.lane.b32.xlu1 %v129_v35, %s759_s17  ;;  %v297_v35 = vld [vmem:[%s960_s2] sm:$0xf0]  ;;  %652 = vmatpush1.msk.msra.mxu0 %vm316_vm0, %v318_v33 }
  0x87   :  { %v74_v38 = vpop.permute.xlu1 %73  ;;  %v143_v39 = vpop.permute.xlu0 %142 }
  0x88   :  { %v76_v40 = vmul.f32 %v74_v38, %v837_v36  ;;  %v145_v41 = vmul.f32 %v143_v39, %v837_v36  ;;  %v317_v39 = vrot.slane %v297_v35, 4 }
  0x89   :  { %269 = vrot.lane.b32.xlu1 %v267_v37, %s759_s17 }
  0x8a   :  { %78 = vrot.lane.b32.xlu0 %v76_v40, %s759_s17 }
  0x8c   :  { %v213_v43 = vpop.permute.xlu1 %212  ;;  %v25_v49 = vpop.permute.xlu0 %24 }
  0x8d   :  { %v215_v44 = vmul.f32 %v213_v43, %v847_v42  ;;  %147 = vrot.lane.b32.xlu1 %v145_v41, %s759_s17  ;;  %v27_v0 = vmul.f32 %v25_v49, %v826_v28  ;;  %v322_v43 = vsel %vm316_vm0, %v320_v34, %v321_v30  ;;  %v303_v49 = vld [vmem:[%s960_s2 + $0x30] sm:$0xff] }
  0x8e   :  { %374 = vmatprep.subr.mxu0 %v322_v43 }
  0x8f   :  { %217 = vrot.lane.b32.xlu0 %v215_v44, %s759_s17  ;;  %v304_v44 = vld [vmem:[%s960_s2 + $0x38] sm:$0xff] }
  0x91   :  { %v281_v45 = vpop.permute.xlu1 %280  ;;  %v233_v54 = vpop.permute.xlu0 %232 }
  0x92   :  { %v283_v46 = vmul.f32 %v281_v45, %v847_v42  ;;  %v235_v57 = vmul.f32 %v233_v54, %v821_v27 }
  0x93   :  { %19 = vperm.xlu0 %722, %v791_v2  }
  0x94   :  { %285 = vrot.lane.b32.xlu1 %v283_v46, %s759_s17 }
  0x96   :  { %v95_v47 = vpop.permute.xlu1 %94  ;;  %v192_v59 = vpop.permute.xlu0 %191 }
  0x97   :  { %725 = vset.pattern.permute.xlu0 %v760_v48  ;;  %v97_v53 = vmul.f32 %v95_v47, %v826_v28  ;;  %v194_v14 = vmul.f32 %v192_v59, %v821_v27  ;;  %v319_v47 = vsel %vm316_vm0, %v317_v39, %v318_v33  ;;  %v327_v48 = vrot.slane %v304_v44, 4 }
  0x98   :  { %89 = vperm.xlu1 %723, %v791_v2   ;;  %227 = vperm.xlu0 %725, %v791_v2  }
  0x99   :  { %375 = vmatpush1.msra.mxu0 %v319_v47  ;;  %654 = vmatprep.subr.msk.mxu1 %vm316_vm0, %v327_v48 }
  0x9b   :  { %v165_v50 = vpop.permute.xlu1 %164  ;;  %v137_v63 = vpop.permute.xlu0 %136 }
  0x9c   :  { %724 = vset.pattern.permute.xlu1 %v761_v51  ;;  %728 = vset.pattern.permute.xlu0 %v762_v52  ;;  %v167_v3 = vmul.f32 %v165_v50, %v821_v27  ;;  %v139_v26 = vmul.f32 %v137_v63, %v837_v36  ;;  %v300_v50 = vld [vmem:[%s960_s2 + $0x18] sm:$0xf0]  ;;  %v766_v52 = vmov 0.0  }
  0x9d   :  { %159 = vperm.xlu1 %724, %v791_v2   ;;  %174 = vperm.xlu0 %728, %v791_v2   ;;  %v326_v54 = vrot.slane %v300_v50, 4 }
  0x9e   :  { %408 = vmatprep.mubr.f32.mxu0 %v766_v52  ;;  %479 = vmatprep.mubr.f32.mxu1 %v766_v52 }
  0x9f   :  { %v328_v59 = vsel %vm316_vm0, %v326_v54, %v327_v48 }
  0xa0   :  { %v53_v55 = vpop.permute.xlu1 %52  ;;  %v41_v4 = vpop.permute.xlu0 %40 }
  0xa1   :  { %726 = vset.pattern.permute.xlu1 %v763_v56  ;;  %99 = vrot.lane.b32.xlu0 %v97_v53, %s759_s17  ;;  %v43_v6 = vmul.f32 %v41_v4, %v837_v36  ;;  %v55_v13 = vmul.f32 %v53_v55, %v826_v28  ;;  %v324_v53 = vrot.slane %v303_v49, 4  ;;  %v299_v55 = vld [vmem:[%s960_s2 + $0x10] sm:$0xf0] }
  0xa2   :  { %34 = vperm.xlu1 %726, %v791_v2   ;;  %730 = vset.pattern.permute.xlu0 %v741_v9 }
  0xa3   :  { %655 = vmatpush1.msk.msra.mxu1 %vm316_vm0, %v324_v53 }
  0xa4   :  { %445 = vmatprep.subr.mxu1 %v328_v59 }
  0xa5   :  { %v122_v58 = vpop.permute.xlu1 %121  ;;  %237 = vrot.lane.b32.xlu0 %v235_v57, %s759_s17  ;;  %v249_v9 = vpop.permute.xlu0 %248  ;;  %v323_v57 = vrot.slane %v299_v55, 4 }
  0xa6   :  { %727 = vset.pattern.permute.xlu1 %v764_v60  ;;  %v251_v10 = vmul.f32 %v249_v9, %v847_v42  ;;  %v124_v23 = vmul.f32 %v122_v58, %v826_v28 }
  0xa7   :  { %104 = vperm.xlu1 %727, %v791_v2  }
  0xaa   :  { %v260_v61 = vpop.permute.xlu1 %259 }
  0xab   :  { %729 = vset.pattern.permute.xlu1 %v765_v62  ;;  %v262_v37 = vmul.f32 %v260_v61, %v821_v27  ;;  %v325_v61 = vsel %vm316_vm0, %v323_v57, %v324_v53 }
  0xac   :  { %242 = vperm.xlu1 %729, %v791_v2   ;;  %446 = vmatpush1.msra.mxu1 %v325_v61 }
  0xaf   :  { %v68_v1 = vpop.permute.xlu1 %67 }
  0xb0   :  { %29 = vrot.lane.b32.xlu1 %v27_v0, %s759_s17  ;;  %v70_v17 = vmul.f32 %v68_v1, %v837_v36  ;;  %v927_v0 = vld [vmem:[%s961_s1] sm:$0xff] }
  0xb4   :  { %v207_v5 = vpop.permute.xlu1 %206  ;;  %169 = vrot.lane.b32.xlu1 %v167_v3, %s759_s17 }
  0xb5   :  { %v209_v18 = vmul.f32 %v207_v5, %v847_v42 }
  0xb8   :  { %45 = vrot.lane.b32.xlu1 %v43_v6, %s759_s17 }
  0xb9   :  { %v275_v7 = vpop.permute.xlu1 %274 }
  0xba   :  { %v277_v40 = vmul.f32 %v275_v7, %v847_v42 }
  0xbe   :  { %v111_v8 = vpop.permute.xlu1 %110 }
  0xbf   :  { %v113_v2 = vmul.f32 %v111_v8, %v837_v36 }
  0xc1   :  { %115 = vrot.lane.b32.xlu0 %v113_v2, %s759_s17 }
  0xc3   :  { %v181_v11 = vpop.permute.xlu1 %180 }
  0xc4   :  { %v183_v12 = vmul.f32 %v181_v11, %v847_v42 }
  0xc5   :  { %253 = vrot.lane.b32.xlu0 %v251_v10, %s759_s17 }
  0xc6   :  { %185 = vrot.lane.b32.xlu1 %v183_v12, %s759_s17 }
  0xf2   :  { %v63_v15 = vpop.permute.xlu1 %62  ;;  %v202_v16 = vpop.permute.xlu0 %201 }
  0xf3   :  { %v65_v19 = vadd.f32 %v63_v15, %v55_v13  ;;  %v204_v20 = vadd.f32 %v202_v16, %v194_v14 }
  0xf5   :  { %v71_v21 = vadd.f32 %v70_v17, %v65_v19  ;;  %v210_v22 = vadd.f32 %v209_v18, %v204_v20 }
  0xf7   :  { %v132_v24 = vpop.permute.xlu1 %131 }
  0xf8   :  { %v134_v29 = vadd.f32 %v132_v24, %v124_v23 }
  0xfa   :  { %v140_v38 = vadd.f32 %v139_v26, %v134_v29 }
  0xfb   :  { %v270_v41 = vpop.permute.xlu1 %269 }
  0xfc   :  { %v272_v45 = vadd.f32 %v270_v41, %v262_v37  ;;  %v79_v46 = vpop.permute.xlu0 %78 }
  0xfd   :  { %v81_v51 = vadd.f32 %v79_v46, %v71_v21 }
  0xfe   :  { %v278_v56 = vadd.f32 %v277_v40, %v272_v45 }
  0xff   :  { %v148_v58 = vpop.permute.xlu1 %147  ;;  %83 = vrot.lane.b32.xlu1 %v81_v51, %s759_s17 }
 0x100   :  { %v150_v60 = vadd.f32 %v148_v58, %v140_v38 }
 0x101   :  { %v218_v62 = vpop.permute.xlu0 %217 }
 0x102   :  { %v220_v63 = vadd.f32 %v218_v62, %v210_v22  ;;  %152 = vrot.lane.b32.xlu0 %v150_v60, %s759_s17 }
 0x104   :  { %222 = vrot.lane.b32.xlu1 %v220_v63, %s759_s17 }
 0x106   :  { %v286_v1 = vpop.permute.xlu1 %285 }
 0x107   :  { %v288_v3 = vadd.f32 %v286_v1, %v278_v56 }
 0x108   :  { %306 = vrot.lane.b32.xlu1 %v927_v0, %s767_s12 }
 0x109   :  { %290 = vrot.lane.b32.xlu0 %v288_v3, %s759_s17 }
 0x10e   :  { %v20_v5 = vpop.permute.xlu0 %19 }
 0x10f   :  { %v22_v13 = vmul.f32 %v20_v5, %v826_v28 }
 0x113   :  { %v90_v4 = vpop.permute.xlu1 %89  ;;  %v228_v7 = vpop.permute.xlu0 %227 }
 0x114   :  { %v92_v12 = vmul.f32 %v90_v4, %v826_v28  ;;  %v230_v14 = vmul.f32 %v228_v7, %v821_v27 }
 0x118   :  { %v160_v6 = vpop.permute.xlu1 %159  ;;  %v175_v9 = vpop.permute.xlu0 %174 }
 0x119   :  { %v162_v20 = vmul.f32 %v160_v6, %v821_v27  ;;  %v177_v28 = vmul.f32 %v175_v9, %v847_v42 }
 0x11c   :  { %v100_v11 = vpop.permute.xlu0 %99 }
 0x11d   :  { %v35_v8 = vpop.permute.xlu1 %34  ;;  %v102_v18 = vadd.f32 %v100_v11, %v92_v12 }
 0x11e   :  { %v37_v16 = vmul.f32 %v35_v8, %v837_v36 }
 0x120   :  { %v238_v21 = vpop.permute.xlu0 %237 }
 0x121   :  { %v240_v24 = vadd.f32 %v238_v21, %v230_v14 }
 0x122   :  { %v105_v2 = vpop.permute.xlu1 %104 }
 0x123   :  { %v107_v17 = vmul.f32 %v105_v2, %v837_v36 }
 0x125   :  { %v108_v25 = vadd.f32 %v107_v17, %v102_v18 }
 0x127   :  { %v243_v10 = vpop.permute.xlu1 %242 }
 0x128   :  { %v245_v23 = vmul.f32 %v243_v10, %v847_v42 }
 0x12a   :  { %v246_v36 = vadd.f32 %v245_v23, %v240_v24 }
 0x12b   :  { %v30_v15 = vpop.permute.xlu1 %29 }
 0x12c   :  { %v32_v19 = vadd.f32 %v30_v15, %v22_v13 }
 0x12e   :  { %v38_v26 = vadd.f32 %v37_v16, %v32_v19 }
 0x12f   :  { %v170_v22 = vpop.permute.xlu1 %169 }
 0x130   :  { %v172_v29 = vadd.f32 %v170_v22, %v162_v20 }
 0x132   :  { %v178_v34 = vadd.f32 %v177_v28, %v172_v29 }
 0x133   :  { %v116_v30 = vpop.permute.xlu0 %115  ;;  %v46_v31 = vpop.permute.xlu1 %45 }
 0x134   :  { %v118_v32 = vadd.f32 %v116_v30, %v108_v25  ;;  %v48_v33 = vadd.f32 %v46_v31, %v38_v26 }
 0x136   :  { %119 = vst.msk [vmem:[#allocation2 + $0x4] sm:$0xf] %vm49_vm1, %v118_v32  ;;  %50 = vst.msk [vmem:[#allocation2] sm:$0xf] %vm49_vm1, %v48_v33 }
 0x137   :  { %v254_v27 = vpop.permute.xlu0 %253 }
 0x138   :  { %v186_v35 = vpop.permute.xlu1 %185  ;;  %v256_v37 = vadd.f32 %v254_v27, %v246_v36 }
 0x139   :  { %v188_v38 = vadd.f32 %v186_v35, %v178_v34 }
 0x13a   :  { %257 = vst.msk [vmem:[#allocation2 + $0xc] sm:$0xf] %vm49_vm1, %v256_v37 }
 0x13b   :  { %189 = vst.msk [vmem:[#allocation2 + $0x8] sm:$0xf] %vm49_vm1, %v188_v38 }
 0x171   :  { %v84_v39 = vpop.permute.xlu1 %83 }
 0x172   :  { %87 = vst.msk [vmem:[#allocation2] sm:$0xf] %vm86_vm2, %v84_v39 }
 0x174   :  { %v153_v42 = vpop.permute.xlu0 %152 }
 0x175   :  { %155 = vst.msk [vmem:[#allocation2 + $0x4] sm:$0xf] %vm86_vm2, %v153_v42 }
 0x176   :  { %v223_v40 = vpop.permute.xlu1 %222 }
 0x177   :  { %225 = vst.msk [vmem:[#allocation2 + $0x8] sm:$0xf] %vm86_vm2, %v223_v40 }
 0x17a   :  { %v307_v41 = vpop.permute.xlu1 %306 }
 0x17b   :  { %v291_v43 = vpop.permute.xlu0 %290  ;;  %653 = vmatmul.mubr.msk.f32.vlgmr.msra.gmra.mxu0 %vm333_vm3, %v307_v41  ;;  %656 = vmatmul.mubr.msk.f32.vlgmr.msra.gmra.mxu1 %vm333_vm3, %v307_v41 }
 0x17c   :  { %293 = vst.msk [vmem:[#allocation2 + $0xc] sm:$0xf] %vm86_vm2, %v291_v43  ;;  %v295_v44 = vld [vmem:[#allocation2] sm:$0xff]  ;;  %565 = vmatprep.mubr.f32.mxu0 %v766_v52  ;;  %636 = vmatprep.mubr.f32.mxu1 %v766_v52 }
 0x17d   :  { %v488_v45 = vcombine.high %v295_v44, %v295_v44 }
 0x17f   :  { %657 = vmatprep.subr.msk.mxu0 %vm316_vm0, %v488_v45 }
 0x180   :  { %658 = vmatpush1.msk.msra.mxu0 %vm316_vm0, %v295_v44 }
 0x181   :  { %659 = vmatmul.mubr.msk.f32.vlgmr.msra.gmra.mxu0 %vm490_vm4, %v927_v0 }
 0x183   :  { %v296_v46 = vld [vmem:[#allocation2 + $0x8] sm:$0xff] }
 0x184   :  { %v489_v47 = vcombine.high %v296_v46, %v296_v46 }
 0x186   :  { %660 = vmatprep.subr.msk.mxu1 %vm316_vm0, %v489_v47 }
 0x187   :  { %661 = vmatpush1.msk.msra.mxu1 %vm316_vm0, %v296_v46 }
 0x188   :  { %662 = vmatmul.mubr.msk.f32.vlgmr.msra.gmra.mxu1 %vm490_vm4, %v927_v0 }
 0x23b   :  { %v410_v48 = vpop.f32.mrf.mxu0  ;;  %v481_v51 = vpop.f32.mrf.mxu1 }
 0x23d   :  { %v412_v49 = vpop.f32.mrf.mxu0  ;;  %v483_v55 = vpop.f32.mrf.mxu1 }
 0x241   :  { %v567_v50 = vpop.f32.mrf.mxu0 }
 0x242   :  { %v568_v52 = vadd.f32 %v567_v50, %v410_v48 }
 0x243   :  { %v569_v53 = vpop.f32.mrf.mxu0 }
 0x244   :  { %643 = vst [vmem:[%s962_s3] sm:$0xff] %v568_v52  ;;  %v570_v54 = vadd.f32 %v569_v53, %v412_v49 }
 0x246   :  { %644 = vst [vmem:[%s962_s3 + $0x8] sm:$0xff] %v570_v54 }
 0x248   :  { %v638_v56 = vpop.f32.mrf.mxu1 }
 0x249   :  { %v639_v57 = vadd.f32 %v638_v56, %v481_v51 }
 0x24a   :  { %v640_v58 = vpop.f32.mrf.mxu1 }
 0x24b   :  { %645 = vst [vmem:[%s962_s3 + $0x10] sm:$0xff] %v639_v57  ;;  %v641_v59 = vadd.f32 %v640_v58, %v483_v55 }
 0x24d   :  { %646 = vst [vmem:[%s962_s3 + $0x18] sm:$0xff] %v641_v59 }

</bundles_post_ra>
